<compile_context>
chip_gen: v6e
topology: v6e:2x2x1
jax: 0.10.0
libtpu: 0.0.40
codegen_flags: <defaults>
</compile_context>

<pallas_src>
import math

import jax
import jax.numpy as jnp
import numpy as np
from jax.experimental import pallas as pl
from jax.experimental.pallas import tpu as pltpu


# ---------------------------------------------------------------------------
# Pallas kernel: fused TextRep.forward
# ---------------------------------------------------------------------------
def textrep_kernel(
    x2_ref,      # [2B, F]   rows 0..B-1 = img features, rows B..2B-1 = txt features
    wproj_ref,   # [F, D]    shared projection_layer_v == projection_layer_l
    attr_ref,    # [A, attr_dim]
    wvl_ref,     # [attr_dim, 2D]  = concat(w_v, w_l) along output dim
    bias_ref,    # [8, D]    rows: b_proj, b_v, b_l, ln1_g, ln1_b, ln2_g, ln2_b, 0
    out_ref,     # [B, out_w]  lane-dense packed output slab
):
    f32 = jnp.float32

    x2 = x2_ref[...].astype(f32)
    wproj = wproj_ref[...].astype(f32)
    attr = attr_ref[...].astype(f32)
    wvl = wvl_ref[...].astype(f32)
    bias = bias_ref[...].astype(f32)

    twoB = x2.shape[0]
    B = twoB // 2
    D = wproj.shape[1]

    b_proj = bias[0:1, :]
    b_v = bias[1:2, :]
    b_l = bias[2:3, :]
    ln1g = bias[3:4, :]
    ln1b = bias[4:5, :]
    ln2g = bias[5:6, :]
    ln2b = bias[6:7, :]

    inv_scale = 1.0 / math.sqrt(float(D))

    # --- fused linear projections (2 MXU passes instead of 4) --------------
    proj = jnp.dot(x2, wproj, preferred_element_type=f32) + b_proj    # [2B, D]
    img_p = proj[:B, :]
    txt_p = proj[B:, :]

    b_vl = jnp.concatenate([b_v, b_l], axis=1)                        # [1, 2D]
    attr_vl = jnp.dot(attr, wvl, preferred_element_type=f32) + b_vl   # [A, 2D]
    attr_v = attr_vl[:, :D]
    attr_l = attr_vl[:, D:]

    # one XLU transpose covering both streams, reused twice per stream
    attr_vl_t = attr_vl.T                                             # [2D, A]
    attr_v_t = attr_vl_t[:D, :]
    attr_l_t = attr_vl_t[D:, :]

    def softmax_lastdim(s):
        m = jnp.max(s, axis=-1, keepdims=True)
        e = jnp.exp(s - m)
        # exact divide: this kernel is overhead-bound, the approx EUP
        # reciprocal only cost accuracy.
        return e / jnp.sum(e, axis=-1, keepdims=True)

    def layernorm(x, g, b, eps=1e-5):
        mu = jnp.mean(x, axis=-1, keepdims=True)
        d = x - mu
        var = jnp.mean(d * d, axis=-1, keepdims=True)
        return d * jax.lax.rsqrt(var + eps) * g + b

    # --- ImageToAttributeTransformer ----------------------------------------
    x0 = img_p
    s1 = jnp.dot(img_p, attr_v_t, preferred_element_type=f32) * inv_scale    # [B, A]
    h = jnp.dot(softmax_lastdim(s1), attr_v, preferred_element_type=f32) + x0
    h = layernorm(h, ln1g, ln1b)
    s2 = jax.lax.dot_general(h, h, (((1,), (1,)), ((), ())),
                             preferred_element_type=f32) * inv_scale         # [B, B]
    h = jnp.dot(softmax_lastdim(s2), h, preferred_element_type=f32) + x0
    h = layernorm(h, ln2g, ln2b)
    img_attr = jnp.dot(h, attr_v_t, preferred_element_type=f32)              # [B, A]
    img_feat = h                                                             # [B, D]

    # --- TextToAttributeTransformer ------------------------------------------
    t0 = txt_p
    st = jnp.dot(txt_p, attr_l_t, preferred_element_type=f32) * inv_scale    # [B, A]
    t = jnp.dot(softmax_lastdim(st), attr_l, preferred_element_type=f32) + t0
    txt_attr = jnp.dot(t, attr_l_t, preferred_element_type=f32)              # [B, A]
    txt_feat = t                                                             # [B, D]

    # --- single lane-dense output store --------------------------------------
    packed = jnp.concatenate([img_attr, img_feat, txt_attr, txt_feat], axis=1)
    pad_w = out_ref.shape[-1] - packed.shape[-1]
    if pad_w > 0:
        packed = jnp.concatenate([packed, jnp.zeros((B, pad_w), f32)], axis=1)
    out_ref[...] = packed


# ---------------------------------------------------------------------------
# Wrappers
# ---------------------------------------------------------------------------
def pack_textrep_params(params):
    """One-time parameter packing (would be done once at model-load time)."""
    D = params["w_proj"].shape[1]
    w_vl = jnp.concatenate([params["w_v"], params["w_l"]], axis=1)        # [attr_dim, 2D]
    bias = jnp.concatenate(
        [params["b_proj"], params["b_v"], params["b_l"],
         params["ln1_g"], params["ln1_b"], params["ln2_g"], params["ln2_b"],
         jnp.zeros((1, D), jnp.float32)],
        axis=0)                                                           # [8, D]
    return {
        "w_proj": params["w_proj"],
        "attr_feat": params["attr_feat"],
        "w_vl": w_vl,
        "bias": bias,
    }


def textrep_forward(inputs, packed):
    B, two, F = inputs.shape
    assert two == 2
    D = packed["w_proj"].shape[1]
    A = packed["attr_feat"].shape[0]

    # De-interleave img/txt once (single tiny XLA copy) so the kernel sees one
    # sublane/lane-friendly [2B, F] operand -> one input DMA, one fused matmul.
    both = jnp.swapaxes(inputs, 0, 1).reshape(2 * B, F)

    used = 2 * A + 2 * D
    out_w = ((used + 127) // 128) * 128          # lane-dense output width

    slab = pl.pallas_call(
        textrep_kernel,
        out_shape=jax.ShapeDtypeStruct((B, out_w), jnp.float32),
        in_specs=[pl.BlockSpec(memory_space=pltpu.MemorySpace.VMEM)] * 5,
        out_specs=pl.BlockSpec(memory_space=pltpu.MemorySpace.VMEM),
    )(both, packed["w_proj"], packed["attr_feat"], packed["w_vl"], packed["bias"])

    img_attr = slab[:, :A]
    img_feat = slab[:, A:A + D]
    txt_attr = slab[:, A + D:2 * A + D]
    txt_feat = slab[:, 2 * A + D:2 * A + 2 * D]
    return img_attr, img_feat, txt_attr, txt_feat


# ---------------------------------------------------------------------------
# Pure-JAX reference (mirrors the PyTorch forward exactly) for verification
# ---------------------------------------------------------------------------
def textrep_reference(inputs, p):
    img = inputs[:, 0, :]
    txt = inputs[:, 1, :]
    img_p = img @ p["w_proj"] + p["b_proj"]
    txt_p = txt @ p["w_proj"] + p["b_proj"]
    attr_v = p["attr_feat"] @ p["w_v"] + p["b_v"]
    attr_l = p["attr_feat"] @ p["w_l"] + p["b_l"]
    D = img_p.shape[-1]
    scale = 1.0 / jnp.sqrt(jnp.float32(D))

    def sdpa(q, k, v):
        s = (q @ k.T) * scale
        w = jax.nn.softmax(s, axis=-1)
        return w @ v

    def ln(x, g, b, eps=1e-5):
        mu = jnp.mean(x, -1, keepdims=True)
        var = jnp.mean((x - mu) ** 2, -1, keepdims=True)
        return (x - mu) / jnp.sqrt(var + eps) * g + b

    x0 = img_p
    h = ln(sdpa(img_p, attr_v, attr_v) + x0, p["ln1_g"], p["ln1_b"])
    h = ln(sdpa(h, h, h) + x0, p["ln2_g"], p["ln2_b"])
    img_attr = h @ attr_v.T

    t0 = txt_p
    t = sdpa(txt_p, attr_l, attr_l) + t0
    txt_attr = t @ attr_l.T
    return img_attr, h, txt_attr, t


# ---------------------------------------------------------------------------
# Main
# ---------------------------------------------------------------------------
if __name__ == "__main__":
    # small shapes consistent with TextRep
    B = 8              # batch
    F = 32             # args.feat_dim   (input_dim)
    D = 32             # args.output_dim
    ATTR_DIM = 16      # args.attr_dim
    NUM_ATTR = 12      # rows of the (synthetic) attribute_features.p
    NUM_REG = 4        # args.num_register_tokens
    A = NUM_ATTR + NUM_REG

    key = jax.random.PRNGKey(0)
    ks = jax.random.split(key, 10)

    # TODO(synk): load_attribute_features() reads a pickle checkpoint; replaced
    # with deterministic random features of the same shape.
    attr_feat_ = jax.random.normal(ks[0], (NUM_ATTR, ATTR_DIM), jnp.float32)
    attr_register_tokens = jax.random.normal(ks[1], (NUM_REG, ATTR_DIM), jnp.float32)
    attr_feat = jnp.concatenate([attr_feat_, attr_register_tokens], axis=0)  # [A, attr_dim]

    params = {
        "attr_feat": attr_feat,
        # shared projection_layer_v == projection_layer_l
        "w_proj": 0.05 * jax.random.normal(ks[2], (F, D), jnp.float32),
        "b_proj": 0.05 * jax.random.normal(ks[3], (1, D), jnp.float32),
        "w_v": 0.05 * jax.random.normal(ks[4], (ATTR_DIM, D), jnp.float32),
        "b_v": 0.05 * jax.random.normal(ks[5], (1, D), jnp.float32),
        "w_l": 0.05 * jax.random.normal(ks[6], (ATTR_DIM, D), jnp.float32),
        "b_l": 0.05 * jax.random.normal(ks[7], (1, D), jnp.float32),
        # nn.LayerNorm defaults: weight=1, bias=0
        "ln1_g": jnp.ones((1, D), jnp.float32),
        "ln1_b": jnp.zeros((1, D), jnp.float32),
        "ln2_g": jnp.ones((1, D), jnp.float32),
        "ln2_b": jnp.zeros((1, D), jnp.float32),
    }

    inputs = jax.random.normal(ks[8], (B, 2, F), jnp.float32)

    packed_params = pack_textrep_params(params)
    outs = textrep_forward(inputs, packed_params)
    outs = jax.block_until_ready(outs)

    refs = textrep_reference(inputs, params)
    # exact softmax divide -> fp32-level agreement with the reference
    for o, r in zip(outs, refs):
        np.testing.assert_allclose(np.asarray(o), np.asarray(r),
                                   rtol=1e-4, atol=1e-4)

    print("KERNEL_OK")
</pallas_src>

<mosaic_0001>
module attributes {stable_mosaic.version = 11 : i64} {
  func.func @textrep_kernel(%arg0: memref<16x32xf32, #tpu.memory_space<vmem>>, %arg1: memref<32x32xf32, #tpu.memory_space<vmem>>, %arg2: memref<16x16xf32, #tpu.memory_space<vmem>>, %arg3: memref<16x64xf32, #tpu.memory_space<vmem>>, %arg4: memref<8x32xf32, #tpu.memory_space<vmem>>, %arg5: memref<8x128xf32, #tpu.memory_space<vmem>>) attributes {dimension_semantics = [], scalar_prefetch = 0 : i64, scratch_operands = 0 : i64, tpu.core_type = #tpu.core_type<tc>} {
    %c0 = arith.constant 0 : index
    %c0_0 = arith.constant 0 : index
    %0 = vector.load %arg0[%c0, %c0_0] : memref<16x32xf32, #tpu.memory_space<vmem>>, vector<16x32xf32>
    %c0_1 = arith.constant 0 : index
    %c0_2 = arith.constant 0 : index
    %1 = vector.load %arg1[%c0_1, %c0_2] : memref<32x32xf32, #tpu.memory_space<vmem>>, vector<32x32xf32>
    %c0_3 = arith.constant 0 : index
    %c0_4 = arith.constant 0 : index
    %2 = vector.load %arg2[%c0_3, %c0_4] : memref<16x16xf32, #tpu.memory_space<vmem>>, vector<16x16xf32>
    %c0_5 = arith.constant 0 : index
    %c0_6 = arith.constant 0 : index
    %3 = vector.load %arg3[%c0_5, %c0_6] : memref<16x64xf32, #tpu.memory_space<vmem>>, vector<16x64xf32>
    %c0_7 = arith.constant 0 : index
    %c0_8 = arith.constant 0 : index
    %4 = vector.load %arg4[%c0_7, %c0_8] : memref<8x32xf32, #tpu.memory_space<vmem>>, vector<8x32xf32>
    %5 = vector.extract_strided_slice %4 {offsets = [0, 0], sizes = [1, 32], strides = [1, 1]} : vector<8x32xf32> to vector<1x32xf32>
    %6 = vector.extract_strided_slice %4 {offsets = [1, 0], sizes = [1, 32], strides = [1, 1]} : vector<8x32xf32> to vector<1x32xf32>
    %7 = vector.extract_strided_slice %4 {offsets = [2, 0], sizes = [1, 32], strides = [1, 1]} : vector<8x32xf32> to vector<1x32xf32>
    %8 = vector.extract_strided_slice %4 {offsets = [3, 0], sizes = [1, 32], strides = [1, 1]} : vector<8x32xf32> to vector<1x32xf32>
    %9 = vector.extract_strided_slice %4 {offsets = [4, 0], sizes = [1, 32], strides = [1, 1]} : vector<8x32xf32> to vector<1x32xf32>
    %10 = vector.extract_strided_slice %4 {offsets = [5, 0], sizes = [1, 32], strides = [1, 1]} : vector<8x32xf32> to vector<1x32xf32>
    %11 = vector.extract_strided_slice %4 {offsets = [6, 0], sizes = [1, 32], strides = [1, 1]} : vector<8x32xf32> to vector<1x32xf32>
    %cst = arith.constant dense<0.000000e+00> : vector<16x32xf32>
    %12 = tpu.matmul %0, %1, %cst {dimension_numbers = #tpu.dot_dimension_numbers<[1], [0], [0], [1], [0, 0, 1, 1], [], []>} : vector<16x32xf32>, vector<32x32xf32>, vector<16x32xf32> -> vector<16x32xf32>
    %13 = vector.broadcast %5 : vector<1x32xf32> to vector<16x32xf32>
    %14 = arith.addf %12, %13 : vector<16x32xf32>
    %15 = vector.extract_strided_slice %14 {offsets = [0, 0], sizes = [8, 32], strides = [1, 1]} : vector<16x32xf32> to vector<8x32xf32>
    %16 = vector.extract_strided_slice %14 {offsets = [8, 0], sizes = [8, 32], strides = [1, 1]} : vector<16x32xf32> to vector<8x32xf32>
    %17 = tpu.concatenate %6, %7 in 1 : vector<1x32xf32>, vector<1x32xf32> -> vector<1x64xf32>
    %cst_9 = arith.constant dense<0.000000e+00> : vector<16x64xf32>
    %18 = tpu.matmul %2, %3, %cst_9 {dimension_numbers = #tpu.dot_dimension_numbers<[1], [0], [0], [1], [0, 0, 1, 1], [], []>} : vector<16x16xf32>, vector<16x64xf32>, vector<16x64xf32> -> vector<16x64xf32>
    %19 = vector.broadcast %17 : vector<1x64xf32> to vector<16x64xf32>
    %20 = arith.addf %18, %19 : vector<16x64xf32>
    %21 = vector.extract_strided_slice %20 {offsets = [0, 0], sizes = [16, 32], strides = [1, 1]} : vector<16x64xf32> to vector<16x32xf32>
    %22 = vector.extract_strided_slice %20 {offsets = [0, 32], sizes = [16, 32], strides = [1, 1]} : vector<16x64xf32> to vector<16x32xf32>
    %23 = tpu.transpose %20, [1, 0] : vector<16x64xf32> -> vector<64x16xf32>
    %24 = vector.extract_strided_slice %23 {offsets = [0, 0], sizes = [32, 16], strides = [1, 1]} : vector<64x16xf32> to vector<32x16xf32>
    %25 = vector.extract_strided_slice %23 {offsets = [32, 0], sizes = [32, 16], strides = [1, 1]} : vector<64x16xf32> to vector<32x16xf32>
    %cst_10 = arith.constant dense<0.000000e+00> : vector<8x16xf32>
    %26 = tpu.matmul %15, %24, %cst_10 {dimension_numbers = #tpu.dot_dimension_numbers<[1], [0], [0], [1], [0, 0, 1, 1], [], []>} : vector<8x32xf32>, vector<32x16xf32>, vector<8x16xf32> -> vector<8x16xf32>
    %cst_11 = arith.constant 0.176776692 : f32
    %27 = vector.broadcast %cst_11 : f32 to vector<8x16xf32>
    %28 = arith.mulf %26, %27 : vector<8x16xf32>
    %cst_12 = arith.constant dense<0xFF800000> : vector<8xf32>
    %29 = vector.multi_reduction <maximumf>, %28, %cst_12 [1] : vector<8x16xf32> to vector<8xf32>
    %30 = vector.shape_cast %29 : vector<8xf32> to vector<8x1xf32>
    %31 = vector.broadcast %30 : vector<8x1xf32> to vector<8x16xf32>
    %32 = arith.subf %28, %31 : vector<8x16xf32>
    %33 = math.exp %32 : vector<8x16xf32>
    %cst_13 = arith.constant dense<0.000000e+00> : vector<8xf32>
    %34 = vector.multi_reduction <add>, %33, %cst_13 [1] : vector<8x16xf32> to vector<8xf32>
    %35 = vector.shape_cast %34 : vector<8xf32> to vector<8x1xf32>
    %36 = vector.broadcast %35 : vector<8x1xf32> to vector<8x16xf32>
    %37 = arith.divf %33, %36 : vector<8x16xf32>
    %cst_14 = arith.constant dense<0.000000e+00> : vector<8x32xf32>
    %38 = tpu.matmul %37, %21, %cst_14 {dimension_numbers = #tpu.dot_dimension_numbers<[1], [0], [0], [1], [0, 0, 1, 1], [], []>} : vector<8x16xf32>, vector<16x32xf32>, vector<8x32xf32> -> vector<8x32xf32>
    %39 = arith.addf %38, %15 : vector<8x32xf32>
    %cst_15 = arith.constant dense<0.000000e+00> : vector<8xf32>
    %40 = vector.multi_reduction <add>, %39, %cst_15 [1] : vector<8x32xf32> to vector<8xf32>
    %41 = vector.shape_cast %40 : vector<8xf32> to vector<8x1xf32>
    %cst_16 = arith.constant 3.200000e+01 : f32
    %42 = vector.broadcast %cst_16 : f32 to vector<8x1xf32>
    %43 = arith.divf %41, %42 : vector<8x1xf32>
    %44 = vector.broadcast %43 : vector<8x1xf32> to vector<8x32xf32>
    %45 = arith.subf %39, %44 : vector<8x32xf32>
    %46 = arith.mulf %45, %45 : vector<8x32xf32>
    %cst_17 = arith.constant dense<0.000000e+00> : vector<8xf32>
    %47 = vector.multi_reduction <add>, %46, %cst_17 [1] : vector<8x32xf32> to vector<8xf32>
    %48 = vector.shape_cast %47 : vector<8xf32> to vector<8x1xf32>
    %cst_18 = arith.constant 3.200000e+01 : f32
    %49 = vector.broadcast %cst_18 : f32 to vector<8x1xf32>
    %50 = arith.divf %48, %49 : vector<8x1xf32>
    %cst_19 = arith.constant 9.99999974E-6 : f32
    %51 = vector.broadcast %cst_19 : f32 to vector<8x1xf32>
    %52 = arith.addf %50, %51 : vector<8x1xf32>
    %53 = math.rsqrt %52 : vector<8x1xf32>
    %54 = vector.broadcast %53 : vector<8x1xf32> to vector<8x32xf32>
    %55 = arith.mulf %45, %54 : vector<8x32xf32>
    %56 = vector.broadcast %8 : vector<1x32xf32> to vector<8x32xf32>
    %57 = arith.mulf %55, %56 : vector<8x32xf32>
    %58 = vector.broadcast %9 : vector<1x32xf32> to vector<8x32xf32>
    %59 = arith.addf %57, %58 : vector<8x32xf32>
    %cst_20 = arith.constant dense<0.000000e+00> : vector<8x8xf32>
    %60 = tpu.matmul %59, %59, %cst_20 {dimension_numbers = #tpu.dot_dimension_numbers<[1], [1], [0], [0], [0, 0, 1, 0], [], []>} : vector<8x32xf32>, vector<8x32xf32>, vector<8x8xf32> -> vector<8x8xf32>
    %cst_21 = arith.constant 0.176776692 : f32
    %61 = vector.broadcast %cst_21 : f32 to vector<8x8xf32>
    %62 = arith.mulf %60, %61 : vector<8x8xf32>
    %cst_22 = arith.constant dense<0xFF800000> : vector<8xf32>
    %63 = vector.multi_reduction <maximumf>, %62, %cst_22 [1] : vector<8x8xf32> to vector<8xf32>
    %64 = vector.shape_cast %63 : vector<8xf32> to vector<8x1xf32>
    %65 = vector.broadcast %64 : vector<8x1xf32> to vector<8x8xf32>
    %66 = arith.subf %62, %65 : vector<8x8xf32>
    %67 = math.exp %66 : vector<8x8xf32>
    %cst_23 = arith.constant dense<0.000000e+00> : vector<8xf32>
    %68 = vector.multi_reduction <add>, %67, %cst_23 [1] : vector<8x8xf32> to vector<8xf32>
    %69 = vector.shape_cast %68 : vector<8xf32> to vector<8x1xf32>
    %70 = vector.broadcast %69 : vector<8x1xf32> to vector<8x8xf32>
    %71 = arith.divf %67, %70 : vector<8x8xf32>
    %cst_24 = arith.constant dense<0.000000e+00> : vector<8x32xf32>
    %72 = tpu.matmul %71, %59, %cst_24 {dimension_numbers = #tpu.dot_dimension_numbers<[1], [0], [0], [1], [0, 0, 1, 1], [], []>} : vector<8x8xf32>, vector<8x32xf32>, vector<8x32xf32> -> vector<8x32xf32>
    %73 = arith.addf %72, %15 : vector<8x32xf32>
    %cst_25 = arith.constant dense<0.000000e+00> : vector<8xf32>
    %74 = vector.multi_reduction <add>, %73, %cst_25 [1] : vector<8x32xf32> to vector<8xf32>
    %75 = vector.shape_cast %74 : vector<8xf32> to vector<8x1xf32>
    %cst_26 = arith.constant 3.200000e+01 : f32
    %76 = vector.broadcast %cst_26 : f32 to vector<8x1xf32>
    %77 = arith.divf %75, %76 : vector<8x1xf32>
    %78 = vector.broadcast %77 : vector<8x1xf32> to vector<8x32xf32>
    %79 = arith.subf %73, %78 : vector<8x32xf32>
    %80 = arith.mulf %79, %79 : vector<8x32xf32>
    %cst_27 = arith.constant dense<0.000000e+00> : vector<8xf32>
    %81 = vector.multi_reduction <add>, %80, %cst_27 [1] : vector<8x32xf32> to vector<8xf32>
    %82 = vector.shape_cast %81 : vector<8xf32> to vector<8x1xf32>
    %cst_28 = arith.constant 3.200000e+01 : f32
    %83 = vector.broadcast %cst_28 : f32 to vector<8x1xf32>
    %84 = arith.divf %82, %83 : vector<8x1xf32>
    %cst_29 = arith.constant 9.99999974E-6 : f32
    %85 = vector.broadcast %cst_29 : f32 to vector<8x1xf32>
    %86 = arith.addf %84, %85 : vector<8x1xf32>
    %87 = math.rsqrt %86 : vector<8x1xf32>
    %88 = vector.broadcast %87 : vector<8x1xf32> to vector<8x32xf32>
    %89 = arith.mulf %79, %88 : vector<8x32xf32>
    %90 = vector.broadcast %10 : vector<1x32xf32> to vector<8x32xf32>
    %91 = arith.mulf %89, %90 : vector<8x32xf32>
    %92 = vector.broadcast %11 : vector<1x32xf32> to vector<8x32xf32>
    %93 = arith.addf %91, %92 : vector<8x32xf32>
    %cst_30 = arith.constant dense<0.000000e+00> : vector<8x16xf32>
    %94 = tpu.matmul %93, %24, %cst_30 {dimension_numbers = #tpu.dot_dimension_numbers<[1], [0], [0], [1], [0, 0, 1, 1], [], []>} : vector<8x32xf32>, vector<32x16xf32>, vector<8x16xf32> -> vector<8x16xf32>
    %cst_31 = arith.constant dense<0.000000e+00> : vector<8x16xf32>
    %95 = tpu.matmul %16, %25, %cst_31 {dimension_numbers = #tpu.dot_dimension_numbers<[1], [0], [0], [1], [0, 0, 1, 1], [], []>} : vector<8x32xf32>, vector<32x16xf32>, vector<8x16xf32> -> vector<8x16xf32>
    %cst_32 = arith.constant 0.176776692 : f32
    %96 = vector.broadcast %cst_32 : f32 to vector<8x16xf32>
    %97 = arith.mulf %95, %96 : vector<8x16xf32>
    %cst_33 = arith.constant dense<0xFF800000> : vector<8xf32>
    %98 = vector.multi_reduction <maximumf>, %97, %cst_33 [1] : vector<8x16xf32> to vector<8xf32>
    %99 = vector.shape_cast %98 : vector<8xf32> to vector<8x1xf32>
    %100 = vector.broadcast %99 : vector<8x1xf32> to vector<8x16xf32>
    %101 = arith.subf %97, %100 : vector<8x16xf32>
    %102 = math.exp %101 : vector<8x16xf32>
    %cst_34 = arith.constant dense<0.000000e+00> : vector<8xf32>
    %103 = vector.multi_reduction <add>, %102, %cst_34 [1] : vector<8x16xf32> to vector<8xf32>
    %104 = vector.shape_cast %103 : vector<8xf32> to vector<8x1xf32>
    %105 = vector.broadcast %104 : vector<8x1xf32> to vector<8x16xf32>
    %106 = arith.divf %102, %105 : vector<8x16xf32>
    %cst_35 = arith.constant dense<0.000000e+00> : vector<8x32xf32>
    %107 = tpu.matmul %106, %22, %cst_35 {dimension_numbers = #tpu.dot_dimension_numbers<[1], [0], [0], [1], [0, 0, 1, 1], [], []>} : vector<8x16xf32>, vector<16x32xf32>, vector<8x32xf32> -> vector<8x32xf32>
    %108 = arith.addf %107, %16 : vector<8x32xf32>
    %cst_36 = arith.constant dense<0.000000e+00> : vector<8x16xf32>
    %109 = tpu.matmul %108, %25, %cst_36 {dimension_numbers = #tpu.dot_dimension_numbers<[1], [0], [0], [1], [0, 0, 1, 1], [], []>} : vector<8x32xf32>, vector<32x16xf32>, vector<8x16xf32> -> vector<8x16xf32>
    %110 = tpu.concatenate %94, %93, %109, %108 in 1 : vector<8x16xf32>, vector<8x32xf32>, vector<8x16xf32>, vector<8x32xf32> -> vector<8x96xf32>
    %cst_37 = arith.constant 0.000000e+00 : f32
    %111 = vector.broadcast %cst_37 : f32 to vector<8x32xf32>
    %112 = tpu.concatenate %110, %111 in 1 : vector<8x96xf32>, vector<8x32xf32> -> vector<8x128xf32>
    %c0_38 = arith.constant 0 : index
    %c0_39 = arith.constant 0 : index
    %113 = vector.load %arg5[%c0_38, %c0_39] : memref<8x128xf32, #tpu.memory_space<vmem>>, vector<8x128xf32>
    tpu.vector_store %arg5[%c0_38, %c0_39], %112 {strides = array<i32>} : memref<8x128xf32, #tpu.memory_space<vmem>>, vector<8x128xf32>,
    return
  }
}

</mosaic_0001>

<bundles_post_ra>
// kernel: tpu_custom_call.1
= control target key start
LH: loop header
LB: loop body
LE: loop exit
PB: predicated region body
PF: predicated region fallthrough
CT: control target
= control target key end

     0   :  { %10 = vsyncpa [#allocation3], 0  ;;  %s1496_s0 = inlined_call_operand.hbm [shape: f32[16,32], index: 0, kind: input, shape index: {}]   ;;  %s1497_s1 = inlined_call_operand.hbm [shape: f32[32,32], index: 1, kind: input, shape index: {}]   ;;  %s1498_s2 = inlined_call_operand.hbm [shape: f32[16,16], index: 2, kind: input, shape index: {}]   ;;  %s1499_s3 = inlined_call_operand.hbm [shape: f32[16,64], index: 3, kind: input, shape index: {}]   ;;  %s1500_s4 = inlined_call_operand.hbm [shape: f32[8,32], index: 4, kind: input, shape index: {}]   ;;  %s1501_s5 = inlined_call_operand.hbm [shape: f32[8,128], index: 5, kind: output, shape index: {}]  }
   0x1   :  { %11 = vsyncpa [#allocation6], 0 }
   0x2   :  { %12 = vsyncpa [#allocation9], 0 }
   0x3   :  { %13 = vsyncpa [#allocation4], 0  ;;  %s1317_s18 = smov [#allocation5]   ;;  %s1318_s20 = smov [#allocation8]  }
   0x4   :  { %s31_s19 = sshll.u32 %s1317_s18, 4  ;;  %s55_s21 = sshll.u32 %s1318_s20, 4  ;;  %s32_s19 = int_to_ptr.vmem [resolvable:$true] %s31_s19  ;;  %s56_s21 = int_to_ptr.vmem [resolvable:$true] %s55_s21 }
   0x5   :  { %s1197_s22 = scalar_lea.vmem %s32_s19, 512  ;;  %p1202_p1 = scmp.lt.s32.totalorder %s32_s19, %s32_s19 }
   0x6   :  { %p1198_p0 = scmp.ne.s32.totalorder %s32_s19, %s1197_s22  ;;  %p1203_p2 = scmp.lt.s32.totalorder %s1197_s22, %s1197_s22 }
   0x8   :  { %p1204_p3 = por %p1203_p2, %p1202_p1 }
   0xa   :  { %p1205_p4 = pnand %p1204_p3, %p1198_p0 }
   0xc   :  { %1208 = shalt.err (!%p1205_p4)
}
   0xd   :  { %s1319_s23 = smov 128   ;;  %s1320_s24 = smov 8  }
   0xe   :  { %37 = dma.hbm_to_vmem [thread:$0]  %s1497_s1, 512, %s32_s19, [#allocation6], %s1319_s23, %s1319_s23, %s1320_s24  }
   0xf   :  { %s1217_s27 = scalar_lea.vmem %s56_s21, 256  ;;  %p1222_p6 = scmp.lt.s32.totalorder %s56_s21, %s56_s21 }
  0x10   :  { %p1218_p5 = scmp.ne.s32.totalorder %s56_s21, %s1217_s27  ;;  %p1223_p7 = scmp.lt.s32.totalorder %s1217_s27, %s1217_s27 }
  0x12   :  { %p1224_p8 = por %p1223_p7, %p1222_p6 }
  0x14   :  { %p1225_p9 = pnand %p1224_p8, %p1218_p5 }
  0x16   :  { %1228 = shalt.err (!%p1225_p9)
}
  0x17   :  { %61 = dma.hbm_to_vmem [thread:$0]  %s1499_s3, 256, %s56_s21, [#allocation9], %s1319_s23, %s1319_s23, %s1320_s24  }
  0x18   :  { %s1321_s30 = smov [#allocation2]   ;;  %s1322_s7 = smov [#allocation7]  }
  0x19   :  { %s19_s6 = sshll.u32 %s1321_s30, 4  ;;  %s43_s8 = sshll.u32 %s1322_s7, 4  ;;  %s20_s6 = int_to_ptr.vmem [resolvable:$true] %s19_s6  ;;  %s44_s8 = int_to_ptr.vmem [resolvable:$true] %s43_s8 }
  0x1a   :  { %s1237_s1 = scalar_lea.vmem %s20_s6, 256  ;;  %p1242_p11 = scmp.lt.s32.totalorder %s20_s6, %s20_s6 }
  0x1b   :  { %p1238_p10 = scmp.ne.s32.totalorder %s20_s6, %s1237_s1  ;;  %p1243_p12 = scmp.lt.s32.totalorder %s1237_s1, %s1237_s1 }
  0x1d   :  { %p1244_p13 = por %p1243_p12, %p1242_p11 }
  0x1f   :  { %p1245_p0 = pnand %p1244_p13, %p1238_p10 }
  0x21   :  { %1248 = shalt.err (!%p1245_p0)
}
  0x22   :  { %25 = dma.hbm_to_vmem [thread:$0]  %s1496_s0, 256, %s20_s6, [#allocation3], %s1319_s23, %s1319_s23, %s1320_s24  }
  0x23   :  { %s1257_s3 = scalar_lea.vmem %s44_s8, 256  ;;  %p1262_p2 = scmp.lt.s32.totalorder %s44_s8, %s44_s8 }
  0x24   :  { %p1258_p1 = scmp.ne.s32.totalorder %s44_s8, %s1257_s3  ;;  %p1263_p3 = scmp.lt.s32.totalorder %s1257_s3, %s1257_s3 }
  0x26   :  { %p1264_p4 = por %p1263_p3, %p1262_p2 }
  0x28   :  { %p1265_p5 = pnand %p1264_p4, %p1258_p1 }
  0x2a   :  { %1268 = shalt.err (!%p1265_p5)
}
  0x2b   :  { %49 = dma.hbm_to_vmem [thread:$0]  %s1498_s2, 256, %s44_s8, [#allocation6], %s1319_s23, %s1319_s23, %s1320_s24  }
  0x2c   :  { %s1323_s13 = smov [#allocation10]  }
  0x2d   :  { %s68_s14 = sshll.u32 %s1323_s13, 4  ;;  %s69_s14 = int_to_ptr.vmem [resolvable:$true] %s68_s14 }
  0x2e   :  { %s1277_s15 = scalar_lea.vmem %s69_s14, 128  ;;  %p1282_p7 = scmp.lt.s32.totalorder %s69_s14, %s69_s14 }
  0x2f   :  { %p1278_p6 = scmp.ne.s32.totalorder %s69_s14, %s1277_s15  ;;  %p1283_p8 = scmp.lt.s32.totalorder %s1277_s15, %s1277_s15 }
  0x31   :  { %p1284_p9 = por %p1283_p8, %p1282_p7 }
  0x33   :  { %p1285_p10 = pnand %p1284_p9, %p1278_p6 }
  0x35   :  { %1288 = shalt.err (!%p1285_p10)
}
  0x36   :  { %71 = dma.hbm_to_vmem [thread:$0]  %s1500_s4, 128, %s69_s14, [#allocation9]  }
  0x37   :  { %1309 = dma.done.wait [#allocation3], 256  }
  0x38   :  { %1310 = vsyncadd [#allocation3], 4294967040 }
  0x39   :  { %1311 = dma.done.wait [#allocation6], 768  }
  0x3a   :  { %1312 = vsyncadd [#allocation6], 4294966528 }
  0x3b   :  { %1313 = dma.done.wait [#allocation9], 384  }
  0x3c   :  { %1314 = vsyncadd [#allocation9], 4294966912  ;;  %vm194_vm0 = vcmask 130048   ;;  %v96_v0 = vld [vmem:[#allocation8 + $0x8] sm:$0xff]  ;;  %v95_v1 = vld [vmem:[#allocation8] sm:$0xff]  ;;  %vm102_vm1 = vcmask 261120   ;;  %v98_v13 = vlaneseq }
  0x3d   :  { %v93_v2 = vld [vmem:[#allocation7] sm:$0xff]  ;;  %1083 = vmatprep.subr.mxu1 %v96_v0  ;;  %v92_v4 = vld [vmem:[#allocation5 + $0x18] sm:$0xff]  ;;  %v94_v5 = vld [vmem:[#allocation7 + $0x8] sm:$0xff]  ;;  %s1324_s2 = smov 32   ;;  %v1325_v12 = vmov 0.0   ;;  %vm1326_vm2 = vmmov 0  }
  0x3e   :  { %1087 = vmatprep.mubr.msk.f32.mxu1 %vm194_vm0, %v93_v2  ;;  %v1390_v3 = vld [vmem:[#allocation10] sm:$0xff]  ;;  %1084 = vmatpush3.msra.mxu1 %v96_v0  ;;  %v91_v7 = vld [vmem:[#allocation5 + $0x10] sm:$0xff]  ;;  %v90_v9 = vld [vmem:[#allocation5 + $0x8] sm:$0xff]  ;;  %v1398_v14 = vshrl.u32 %v98_v13, 7  ;;  %s1327_s4 = smov 96   ;;  %vm564_vm3 = vcmask 64512  }
  0x3f   :  { %v185_v6 = vrot.slane %v1390_v3, 1  ;;  %1072 = vmatprep.subr.mxu0 %v92_v4  ;;  %1085 = vmatprep.subr.mxu1 %v95_v1  ;;  %v87_v8 = vld [vmem:[#allocation2] sm:$0xff]  ;;  %v89_v10 = vld [vmem:[#allocation5] sm:$0xff]  ;;  %v88_v11 = vld [vmem:[#allocation2 + $0x8] sm:$0xff]  ;;  %s1328_s17 = smov 16   ;;  %s1329_s18 = smov 48  }
  0x40   :  { %1073 = vmatpush3.msra.mxu0 %v92_v4  ;;  %1086 = vmatpush3.msra.mxu1 %v95_v1  ;;  %v192_v16 = vsub.s32 1, %v1398_v14  ;;  %v100_v23 = vsub.s32 0, %v1398_v14  ;;  %v482_v57 = vsub.s32 3, %v1398_v14  ;;  %v487_v58 = vsub.s32 4, %v1398_v14  ;;  %s1330_s19 = smov 64   ;;  %s1331_s20 = smov [#allocation11]  }
  0x41   :  { %186 = vrot.lane.b32.xlu0 %v185_v6, %s1324_s2  ;;  %1088 = vmatmul.mubr.msk.f32.vlgmr.msra.gmra.mxu1 %vm194_vm0, %v94_v5  ;;  %vm995_vm4 = vcmask 392192   ;;  %vm997_vm5 = vcmask 523264   ;;  %s1008_s21 = sshll.u32 %s1331_s20, 4  ;;  %vm999_vm6 = vcmask 785408   ;;  %s1009_s21 = int_to_ptr.vmem [resolvable:$true] %s1008_s21 }
  0x42   :  { %1074 = vmatprep.subr.mxu0 %v91_v7  ;;  %1080 = vmatprep.mubr.msk.f32.mxu0 %vm102_vm1, %v87_v8  ;;  %v101_v24 = vrot.slane %v1390_v3, %v100_v23  ;;  %v483_v59 = vrot.slane %v1390_v3, %v482_v57  ;;  %v488_v62 = vrot.slane %v1390_v3, %v487_v58  ;;  %s1289_s22 = scalar_lea.vmem %s1009_s21, 128  ;;  %p1294_p12 = scmp.lt.s32.totalorder %s1009_s21, %s1009_s21 }
  0x43   :  { %1075 = vmatpush3.msra.mxu0 %v91_v7  ;;  %1090 = vmatprep.subr.mxu1 %v1325_v12  ;;  %p1290_p11 = scmp.ne.s32.totalorder %s1009_s21, %s1289_s22  ;;  %p1295_p13 = scmp.lt.s32.totalorder %s1289_s22, %s1289_s22 }
  0x44   :  { %1076 = vmatprep.subr.mxu0 %v90_v9  ;;  %1098 = vmatprep.mubr.msk.f32.mxu1 %vm1326_vm2, %v1325_v12 }
  0x45   :  { %1077 = vmatpush3.msra.mxu0 %v90_v9  ;;  %p1296_p0 = por %p1295_p13, %p1294_p12 }
  0x46   :  { %1078 = vmatprep.subr.mxu0 %v89_v10 }
  0x47   :  { %1079 = vmatpush3.msra.mxu0 %v89_v10  ;;  %p1297_p1 = pnand %p1296_p0, %p1290_p11 }
  0x48   :  { %1081 = vmatmul.mubr.msk.f32.vlgmr.msra.gmra.mxu0 %vm102_vm1, %v88_v11  ;;  %1101 = vmatprep.subr.mxu0 %v1325_v12 }
  0x49   :  { %1105 = vmatprep.mubr.msk.f32.mxu0 %vm1326_vm2, %v1325_v12 }
  0xb3   :  { %v187_v15 = vpop.permute.xlu0 %186 }
  0xb4   :  { %v189_v17 = vsel %vm102_vm1, %v1390_v3, %v187_v15 }
  0xb5   :  { %v193_v18 = vrot.slane %v189_v17, %v192_v16 }
 0x101   :  { %v1089_v19 = vpop.f32.mrf.mxu1 }
 0x102   :  { %v273_v20 = vadd.f32 %v1089_v19, %v193_v18 }
 0x103   :  { %v267_v21 = vpop.f32.mrf.mxu1 }
 0x104   :  { %v1403_v22 = vadd.f32 %v267_v21, %v193_v18  ;;  %1102 = vmatpush3.msra.mxu0 %v273_v20 }
 0x105   :  { %1103 = vmatprep.subr.mxu0 %v1325_v12 }
 0x106   :  { %276 = vxpose.xlu0.b32.start [1/2] (short) (narrow) %v1403_v22, 64  ;;  %1104 = vmatpush3.msra.mxu0 %v1403_v22 }
 0x107   :  { %1108 = vmatprep.subr.mxu0 %v1325_v12 }
 0x108   :  { %v1082_v25 = vpop.f32.mrf.mxu0 }
 0x109   :  { %v1411_v26 = vadd.f32 %v1082_v25, %v101_v24 }
 0x10a   :  { %277 = vxpose.xlu0.b32.end [2/2] (short) (narrow) %v273_v20, 64  ;;  %v175_v31 = vpop.f32.mrf.mxu0 }
 0x10b   :  { %v1425_v32 = vadd.f32 %v175_v31, %v101_v24 }
 0x14b   :  { %834 = vrot.lane.b32.xlu0 %v273_v20, %s1327_s4 }
 0x182   :  { %v1418_v27 = vpop.trf.xlu0 }
 0x186   :  { %v1420_v28 = vpop.trf.xlu0 }
 0x18a   :  { %v294_v29 = vpop.trf.xlu0 }
 0x18e   :  { %v295_v30 = vpop.trf.xlu0 }
 0x18f   :  { %1091 = vmatpush3.msra.mxu1 %v295_v30 }
 0x190   :  { %1092 = vmatprep.subr.mxu1 %v1325_v12 }
 0x191   :  { %1093 = vmatpush3.msra.mxu1 %v294_v29 }
 0x192   :  { %1094 = vmatprep.subr.mxu1 %v1325_v12  ;;  %v296_v11 = vpop.trf.xlu0 }
 0x193   :  { %1095 = vmatpush3.msra.mxu1 %v1420_v28 }
 0x194   :  { %1096 = vmatprep.subr.mxu1 %v1325_v12 }
 0x195   :  { %1097 = vmatpush3.msra.mxu1 %v1418_v27 }
 0x196   :  { %1099 = vmatmul.mubr.msk.f32.vlgmr.msra.gmra.mxu1 %vm102_vm1, %v1425_v32  ;;  %1113 = vmatprep.subr.mxu1 %v1325_v12  ;;  %v297_v15 = vpop.trf.xlu0 }
 0x197   :  { %1115 = vmatprep.mubr.msk.f32.mxu1 %vm1326_vm2, %v1325_v12 }
 0x19a   :  { %v298_v16 = vpop.trf.xlu0 }
 0x19e   :  { %v299_v19 = vpop.trf.xlu0 }
 0x256   :  { %v377_v33 = vpop.f32.mrf.mxu1 }
 0x257   :  { %v381_v34 = vmul.f32 0.17677669, %v377_v33 }
 0x258   :  { %v1100_v35 = vpop.f32.mrf.mxu1 }
 0x259   :  { %v382_v36 = vsel %vm194_vm0, %v381_v34, -inf }
 0x25a   :  { %383 = vmax.xlane.f32.xlu1 %v382_v36 }
 0x2e3   :  { %v384_v37 = vpop.xlane.xlu1 %383 }
 0x2e4   :  { %v385_v38 = vsub.f32 %v381_v34, %v384_v37 }
 0x2e6   :  { %v386_v39 = vmul.f32 1.442695, %v385_v38 }
 0x2e8   :  { %1173 = vpow2.f32 %v386_v39 }
 0x2f5   :  { %v1174_v40 = vpop.eup %1173 }
 0x2f6   :  { %v388_v41 = vsel %vm194_vm0, %v1174_v40, 0.0 }
 0x2f7   :  { %389 = vadd.xlane.f32.xlu1 %v388_v41 }
 0x380   :  { %v390_v42 = vpop.xlane.xlu1 %389 }
 0x381   :  { %1175 = vrcp.f32 %v390_v42 }
 0x38e   :  { %v1176_v43 = vpop.eup %1175 }
 0x38f   :  { %v392_v44 = vmul.f32 %v1176_v43, %v1174_v40  ;;  %v664_v43 = vsub.s32 5, %v1398_v14 }
 0x391   :  { %1106 = vmatmul.mubr.msk.f32.vlgmr.msra.gmra.mxu0 %vm194_vm0, %v392_v44  ;;  %v669_v44 = vsub.s32 6, %v1398_v14 }
 0x392   :  { %1110 = vmatprep.mubr.msk.f32.mxu0 %vm1326_vm2, %v1325_v12 }
 0x451   :  { %v462_v45 = vpop.f32.mrf.mxu0 }
 0x452   :  { %v463_v46 = vadd.f32 %v462_v45, %v1425_v32  ;;  %v665_v45 = vrot.slane %v1390_v3, %v664_v43 }
 0x453   :  { %v1107_v47 = vpop.f32.mrf.mxu0 }
 0x454   :  { %v466_v48 = vsel %vm102_vm1, %v463_v46, 0.0 }
 0x455   :  { %467 = vadd.xlane.f32.xlu1 %v466_v48  ;;  %v670_v48 = vrot.slane %v1390_v3, %v669_v44 }
 0x4de   :  { %v468_v49 = vpop.xlane.xlu1 %467 }
 0x4df   :  { %v470_v50 = vmul.f32 0.03125, %v468_v49 }
 0x4e1   :  { %v471_v51 = vsub.f32 %v463_v46, %v470_v50 }
 0x4e3   :  { %v472_v52 = vmul.f32 %v471_v51, %v471_v51 }
 0x4e5   :  { %v473_v53 = vsel %vm102_vm1, %v472_v52, 0.0  ;;  %v835_v52 = vpop.permute.xlu0 %834 }
 0x4e6   :  { %474 = vadd.xlane.f32.xlu1 %v473_v53 }
 0x56f   :  { %v475_v54 = vpop.xlane.xlu1 %474 }
 0x570   :  { %v476_v55 = vmul.f32 0.03125, %v475_v54 }
 0x572   :  { %v477_v56 = vadd.f32 1e-05, %v476_v55 }
 0x574   :  { %1177 = vrsqrt.f32 %v477_v56 }
 0x581   :  { %v1178_v60 = vpop.eup %1177 }
 0x582   :  { %v479_v61 = vmul.f32 %v1178_v60, %v471_v51 }
 0x584   :  { %v484_v63 = vmul.f32 %v483_v59, %v479_v61 }
 0x586   :  { %v489_v0 = vadd.f32 %v488_v62, %v484_v63 }
 0x588   :  { %1109 = vmatpush3.xpose.msk.msra.mxu0 %vm102_vm1, %v489_v0  ;;  %1114 = vmatpush3.msra.mxu1 %v489_v0 }
 0x589   :  { %1118 = vmatprep.subr.mxu0 %v1325_v12  ;;  %1129 = vmatprep.subr.mxu1 %v1325_v12 }
 0x58b   :  { %1111 = vmatmul.mubr.msk.f32.vlgmr.msra.gmra.mxu0 %vm102_vm1, %v489_v0 }
 0x58c   :  { %1119 = vmatpush3.msra.mxu0 %v295_v30  ;;  %1126 = vmatprep.mubr.msk.f32.mxu0 %vm1326_vm2, %v1325_v12 }
 0x58d   :  { %1120 = vmatprep.subr.mxu0 %v1325_v12 }
 0x58e   :  { %1121 = vmatpush3.msra.mxu0 %v294_v29 }
 0x58f   :  { %1122 = vmatprep.subr.mxu0 %v1325_v12 }
 0x590   :  { %1123 = vmatpush3.msra.mxu0 %v1420_v28 }
 0x591   :  { %1124 = vmatprep.subr.mxu0 %v1325_v12 }
 0x592   :  { %1125 = vmatpush3.msra.mxu0 %v1418_v27 }
 0x593   :  { %1140 = vmatprep.subr.mxu0 %v1325_v12 }
 0x64b   :  { %v559_v1 = vpop.f32.mrf.mxu0 }
 0x64c   :  { %v563_v2 = vmul.f32 0.17677669, %v559_v1 }
 0x64d   :  { %v1112_v4 = vpop.f32.mrf.mxu0 }
 0x64e   :  { %v565_v5 = vsel %vm564_vm3, %v563_v2, -inf }
 0x64f   :  { %566 = vmax.xlane.f32.xlu1 %v565_v5 }
 0x6d8   :  { %v567_v6 = vpop.xlane.xlu1 %566 }
 0x6d9   :  { %v568_v7 = vsub.f32 %v563_v2, %v567_v6 }
 0x6db   :  { %v569_v8 = vmul.f32 1.442695, %v568_v7 }
 0x6dd   :  { %1179 = vpow2.f32 %v569_v8 }
 0x6ea   :  { %v1180_v9 = vpop.eup %1179 }
 0x6eb   :  { %v571_v10 = vsel %vm564_vm3, %v1180_v9, 0.0 }
 0x6ec   :  { %572 = vadd.xlane.f32.xlu1 %v571_v10 }
 0x775   :  { %v573_v13 = vpop.xlane.xlu1 %572 }
 0x776   :  { %1181 = vrcp.f32 %v573_v13 }
 0x783   :  { %v1182_v17 = vpop.eup %1181 }
 0x784   :  { %v575_v18 = vmul.f32 %v1182_v17, %v1180_v9 }
 0x786   :  { %1116 = vmatmul.mubr.msk.f32.vlgmr.msra.gmra.mxu1 %vm564_vm3, %v575_v18 }
 0x787   :  { %1130 = vmatpush3.msra.mxu1 %v299_v19  ;;  %1137 = vmatprep.mubr.msk.f32.mxu1 %vm1326_vm2, %v1325_v12 }
 0x788   :  { %1131 = vmatprep.subr.mxu1 %v1325_v12 }
 0x789   :  { %1132 = vmatpush3.msra.mxu1 %v298_v16 }
 0x78a   :  { %1133 = vmatprep.subr.mxu1 %v1325_v12 }
 0x78b   :  { %1134 = vmatpush3.msra.mxu1 %v297_v15 }
 0x78c   :  { %1135 = vmatprep.subr.mxu1 %v1325_v12 }
 0x78d   :  { %1136 = vmatpush3.msra.mxu1 %v296_v11 }
 0x78e   :  { %1138 = vmatmul.mubr.msk.f32.vlgmr.msra.gmra.mxu1 %vm102_vm1, %v1411_v26  ;;  %1147 = vmatprep.subr.mxu1 %v1325_v12 }
 0x78f   :  { %1148 = vmatpush3.msra.mxu1 %v299_v19  ;;  %1155 = vmatprep.mubr.msk.f32.mxu1 %vm1326_vm2, %v1325_v12 }
 0x790   :  { %1149 = vmatprep.subr.mxu1 %v1325_v12 }
 0x791   :  { %1150 = vmatpush3.msra.mxu1 %v298_v16 }
 0x792   :  { %1151 = vmatprep.subr.mxu1 %v1325_v12 }
 0x793   :  { %1152 = vmatpush3.msra.mxu1 %v297_v15 }
 0x794   :  { %1153 = vmatprep.subr.mxu1 %v1325_v12 }
 0x795   :  { %1154 = vmatpush3.msra.mxu1 %v296_v11 }
 0x846   :  { %v645_v20 = vpop.f32.mrf.mxu1 }
 0x847   :  { %v646_v21 = vadd.f32 %v645_v20, %v1425_v32 }
 0x848   :  { %v1117_v23 = vpop.f32.mrf.mxu1 }
 0x849   :  { %v649_v24 = vsel %vm102_vm1, %v646_v21, 0.0 }
 0x84a   :  { %650 = vadd.xlane.f32.xlu1 %v649_v24 }
 0x84e   :  { %v814_v25 = vpop.f32.mrf.mxu1 }
 0x84f   :  { %v818_v27 = vmul.f32 0.17677669, %v814_v25 }
 0x850   :  { %v1139_v28 = vpop.f32.mrf.mxu1 }
 0x851   :  { %v819_v29 = vsel %vm194_vm0, %v818_v27, -inf }
 0x852   :  { %820 = vmax.xlane.f32.xlu1 %v819_v29 }
 0x8d3   :  { %v651_v30 = vpop.xlane.xlu1 %650 }
 0x8d4   :  { %v652_v31 = vmul.f32 0.03125, %v651_v30 }
 0x8d6   :  { %v653_v33 = vsub.f32 %v646_v21, %v652_v31 }
 0x8d8   :  { %v654_v34 = vmul.f32 %v653_v33, %v653_v33 }
 0x8da   :  { %v655_v35 = vsel %vm102_vm1, %v654_v34, 0.0 }
 0x8db   :  { %v821_v36 = vpop.xlane.xlu1 %820  ;;  %656 = vadd.xlane.f32.xlu1 %v655_v35 }
 0x8dc   :  { %v822_v37 = vsub.f32 %v818_v27, %v821_v36 }
 0x8de   :  { %v823_v32 = vmul.f32 1.442695, %v822_v37 }
 0x8e0   :  { %1183 = vpow2.f32 %v823_v32 }
 0x8ed   :  { %v1184_v38 = vpop.eup %1183 }
 0x8ee   :  { %v825_v39 = vsel %vm194_vm0, %v1184_v38, 0.0 }
 0x8ef   :  { %826 = vadd.xlane.f32.xlu1 %v825_v39 }
 0x900   :  { %832 = vrot.lane.b32.xlu1 %v1403_v22, %s1327_s4 }
 0x964   :  { %v657_v40 = vpop.xlane.xlu1 %656 }
 0x965   :  { %v658_v41 = vmul.f32 0.03125, %v657_v40 }
 0x967   :  { %v659_v42 = vadd.f32 1e-05, %v658_v41 }
 0x969   :  { %1185 = vrsqrt.f32 %v659_v42 }
 0x976   :  { %v1186_v46 = vpop.eup %1185 }
 0x977   :  { %v661_v47 = vmul.f32 %v1186_v46, %v653_v33 }
 0x978   :  { %v827_v49 = vpop.xlane.xlu1 %826 }
 0x979   :  { %1187 = vrcp.f32 %v827_v49  ;;  %v666_v50 = vmul.f32 %v665_v45, %v661_v47 }
 0x97b   :  { %v671_v51 = vadd.f32 %v670_v48, %v666_v50 }
 0x97c   :  { %v833_v14 = vpop.permute.xlu1 %832 }
 0x97d   :  { %984 = vrot.lane.b32.xlu1 %v671_v51, %s1328_s17  ;;  %1127 = vmatmul.mubr.msk.f32.vlgmr.msra.gmra.mxu0 %vm102_vm1, %v671_v51 }
 0x97e   :  { %1141 = vmatpush3.msra.mxu0 %v835_v52  ;;  %1144 = vmatprep.mubr.msk.f32.mxu0 %vm1326_vm2, %v1325_v12 }
 0x97f   :  { %1142 = vmatprep.subr.mxu0 %v1325_v12 }
 0x980   :  { %1143 = vmatpush3.msra.mxu0 %v833_v14 }
 0x986   :  { %v1188_v22 = vpop.eup %1187 }
 0x987   :  { %v829_v53 = vmul.f32 %v1188_v22, %v1184_v38 }
 0x989   :  { %1145 = vmatmul.mubr.msk.f32.vlgmr.msra.gmra.mxu0 %vm194_vm0, %v829_v53 }
 0x9ef   :  { %v985_v12 = vpop.permute.xlu1 %984 }
 0xa3d   :  { %v741_v3 = vpop.f32.mrf.mxu0 }
 0xa3e   :  { %v994_v61 = vsel %vm194_vm0, %v741_v3, %v985_v12 }
 0xa3f   :  { %v1128_v54 = vpop.f32.mrf.mxu0 }
 0xa49   :  { %v907_v55 = vpop.f32.mrf.mxu0 }
 0xa4a   :  { %v908_v56 = vadd.f32 %v907_v55, %v1411_v26 }
 0xa4b   :  { %v1146_v57 = vpop.f32.mrf.mxu0 }
 0xa4c   :  { %1156 = vmatmul.mubr.msk.f32.vlgmr.msra.gmra.mxu1 %vm102_vm1, %v908_v56 }
 0xb0c   :  { %v980_v58 = vpop.f32.mrf.mxu1 }
 0xb0d   :  { %988 = vrot.lane.b32.xlu1 %v980_v58, %s1329_s18 }
 0xb0e   :  { %v1157_v59 = vpop.f32.mrf.mxu1 }
 0xb11   :  { %991 = vrot.lane.b32.xlu1 %v908_v56, %s1330_s19 }
 0xb7f   :  { %v989_v60 = vpop.permute.xlu1 %988 }
 0xb80   :  { %v996_v62 = vsel %vm995_vm4, %v994_v61, %v989_v60 }
 0xb83   :  { %v992_v26 = vpop.permute.xlu1 %991 }
 0xb84   :  { %v998_v63 = vsel %vm997_vm5, %v996_v62, %v992_v26 }
 0xb85   :  { %v1000_v0 = vsel %vm999_vm6, %v998_v63, 0.0 }
 0xb86   :  { %1001 = vst [vmem:[#allocation11] sm:$0xff] %v1000_v0 }
 0xb87   :  { %1300 = shalt.err (!%p1297_p1)
}
 0xb88   :  { %1011 = dma.vmem_to_hbm [thread:$0]  %s1009_s21, 128, %s1501_s5, [#allocation4]  }
 0xb89   :  { %1315 = dma.done.wait [#allocation4], 128  }
 0xb8a   :  { %1316 = vsyncadd [#allocation4], 4294967168 }
 0xb8b   :  { %1015 = vsyncpa [#allocation3], 1 }
 0xb8c   :  { %1016 = vsyncpa [#allocation6], 1 }
 0xb8d   :  { %1017 = vsyncpa [#allocation9], 1 }
 0xb8e   :  { %1018 = vsyncpa [#allocation4], 1 }

</bundles_post_ra>
